<compile_context>
chip_gen: v7x
topology: tpu7x:2x2x1
jax: 0.10.0
libtpu: 0.0.40
codegen_flags: <defaults>
</compile_context>

<pallas_src>
import jax
import jax.numpy as jnp
import numpy as np
from jax import lax
from jax.experimental import pallas as pl
from jax.experimental.pallas import tpu as pltpu

_EPS = 1e-5  # PyTorch InstanceNorm2d default (affine=False, biased variance)


def _pick_sample_block(N, C):
    # Fill the 8 f32 sublanes with extra samples when channels are narrow,
    # but keep >= 2 grid steps so both TensorCores get work on v7x.
    if N < 4 or C >= 8:
        return 1
    k = min(max(1, 8 // C), N // 2)
    while k > 1 and N % k != 0:
        k -= 1
    return max(k, 1)


def _make_kernel(H, W, C, kblk):
    Wp = W + 2                     # padded row width
    P = (H + 2) * Wp               # flattened padded spatial size
    M = H * Wp - 2                 # conv-output span (incl. inter-row garbage)
    OFF = Wp + 1                   # flat offset of interior pixel (0,0)
    KC = kblk * C
    HW = H * W
    offsets = [ky * Wp + kx for ky in range(3) for kx in range(3)]
    inv_hw = 1.0 / float(HW)
    inv_wp = 1.0 / float(Wp)

    def kernel(x_ref, w1_ref, w2_ref, o_ref, pad_ref):
        # x_ref  : (KC, HW)  un-padded, W-contiguous input rows (sample-major)
        # w1/w2  : (C, 9C)   fused tap weights  w[co, t*C + ci]
        # o_ref  : (KC, HW)  W-contiguous output (dense store)
        # pad_ref: (KC, P)   VMEM scratch reused as the padded operand of both convs
        x = x_ref[...]
        w1 = w1_ref[...]
        w2 = w2_ref[...]

        # in-kernel mask of real columns along the Wp-strided flat axis:
        # 1.0 where (m mod Wp) < W.  Exact for these magnitudes in f32.
        mf = lax.broadcasted_iota(jnp.int32, (1, M), 1).astype(jnp.float32)
        col = mf - jnp.floor(mf * inv_wp) * float(Wp)
        mask = (col < float(W)).astype(jnp.float32)

        def conv3x3(xp, w):
            # one fused im2col dot per sample: (C, 9C) @ (9C, M)
            outs = []
            for s in range(kblk):
                rows = xp[s * C:(s + 1) * C]
                im2col = jnp.concatenate(
                    [rows[:, off:off + M] for off in offsets], axis=0)
                outs.append(jnp.dot(w, im2col,
                                    preferred_element_type=jnp.float32))
            return outs[0] if kblk == 1 else jnp.concatenate(outs, axis=0)

        def instance_norm(z):
            # single-pass per-row (= per sample, per channel) statistics
            zm = z * mask
            s1 = jnp.sum(zm, axis=1, keepdims=True)
            s2 = jnp.sum(zm * z, axis=1, keepdims=True)
            mean = s1 * inv_hw
            var = jnp.maximum(s2 * inv_hw - mean * mean, 0.0)
            return (z - mean) * lax.rsqrt(var + _EPS)

        # ---- fold the halo pad in-kernel: zero the scratch, copy rows in
        pad_ref[...] = jnp.zeros((KC, P), jnp.float32)
        for h in range(H):
            base = (h + 1) * Wp + 1
            pad_ref[:, base:base + W] = x[:, h * W:(h + 1) * W]

        # ---- conv1 -> InstanceNorm -> ReLU   (conv bias cancels under IN)
        y1 = jnp.maximum(instance_norm(conv3x3(pad_ref[...], w1)), 0.0) * mask

        # ---- re-pad for conv2: scratch head/tail are still zero; the masked
        # y1 store covers the whole interior incl. inter-row garbage lanes.
        pad_ref[:, OFF:OFF + M] = y1

        # ---- conv2 -> InstanceNorm
        y2 = instance_norm(conv3x3(pad_ref[...], w2))

        # ---- compact Wp-strided rows to W-contiguous, residual add,
        #      single dense store (lane dim = H*W).
        y2c = jnp.concatenate(
            [y2[:, h * Wp:h * Wp + W] for h in range(H)], axis=1)
        o_ref[...] = x + y2c

    return kernel, P, M


def residual_block(x_nchw, w1_hwio, b1, w2_hwio, b2):
    """x: (N, C, H, W) f32; w1/w2: (3, 3, C, C) HWIO; b1/b2: (C,).

    Conv biases are accepted for API parity with nn.Conv2d but unused: a
    per-channel bias cancels exactly under the following non-affine IN.
    """
    del b1, b2
    N, C, H, W = x_nchw.shape
    kblk = _pick_sample_block(N, C)
    Nb = N // kblk
    KC = kblk * C
    HW = H * W
    kernel, P, M = _make_kernel(H, W, C, kblk)

    # free reshape, no padding pass over HBM
    xw = x_nchw.astype(jnp.float32).reshape(Nb, KC, HW)

    def prep_w(w):   # HWIO (ky,kx,ci,co) -> (co, tap*C + ci), tap-major
        return jnp.transpose(w.astype(jnp.float32), (3, 0, 1, 2)).reshape(C, 9 * C)

    # rough per-step VMEM need; keep headroom under the v7x 64 MiB ceiling.
    # TODO(synk): for production shapes (large C, H*W) add a spatial row-block
    # grid axis (+1-row halo) and/or bf16 dot operands to stay within VMEM.
    need = 4 * (4 * KC * HW + 4 * 9 * C * C + KC * P + 9 * C * M + 6 * KC * M)
    vmem_limit = int(min(48 * 1024 * 1024, max(8 * need, 16 * 1024 * 1024)))

    out = pl.pallas_call(
        kernel,
        out_shape=jax.ShapeDtypeStruct((Nb, KC, HW), jnp.float32),
        grid_spec=pltpu.PrefetchScalarGridSpec(
            num_scalar_prefetch=0,
            grid=(Nb,),
            in_specs=[
                pl.BlockSpec((None, KC, HW), lambda n: (n, 0, 0)),  # x block
                pl.BlockSpec((C, 9 * C), lambda n: (0, 0)),          # w1 resident
                pl.BlockSpec((C, 9 * C), lambda n: (0, 0)),          # w2 resident
            ],
            out_specs=pl.BlockSpec((None, KC, HW), lambda n: (n, 0, 0)),
            scratch_shapes=[pltpu.VMEM((KC, P), jnp.float32)],
        ),
        compiler_params=pltpu.CompilerParams(
            dimension_semantics=("parallel",),   # batch is independent
            vmem_limit_bytes=vmem_limit),
    )(xw, prep_w(w1_hwio), prep_w(w2_hwio))

    return out.reshape(N, C, H, W)     # free reshape, no slice pass


def _reference(x_nchw, w1, b1, w2, b2):
    """Pure-JAX reference matching PyTorch semantics (with conv biases)."""
    x = jnp.transpose(x_nchw, (0, 2, 3, 1)).astype(jnp.float32)

    def conv(z, w, b):
        y = lax.conv_general_dilated(
            z, w, window_strides=(1, 1), padding="SAME",
            dimension_numbers=("NHWC", "HWIO", "NHWC"))
        return y + b.reshape(1, 1, 1, -1)

    def inorm(z):
        mu = jnp.mean(z, axis=(1, 2), keepdims=True)
        var = jnp.mean((z - mu) ** 2, axis=(1, 2), keepdims=True)
        return (z - mu) * lax.rsqrt(var + _EPS)

    y = jnp.maximum(inorm(conv(x, w1, b1)), 0.0)
    y = inorm(conv(y, w2, b2))
    return jnp.transpose(x + y, (0, 3, 1, 2))


if __name__ == "__main__":
    N, C, H, W = 2, 4, 16, 16

    key = jax.random.PRNGKey(0)
    k1, k2, k3, k4, k5 = jax.random.split(key, 5)
    w1 = jax.random.normal(k1, (3, 3, C, C), jnp.float32) * 0.2
    b1 = jax.random.normal(k2, (C,), jnp.float32) * 0.1
    w2 = jax.random.normal(k3, (3, 3, C, C), jnp.float32) * 0.2
    b2 = jax.random.normal(k4, (C,), jnp.float32) * 0.1
    x = jax.random.normal(k5, (N, C, H, W), jnp.float32)

    out = residual_block(x, w1, b1, w2, b2)
    out = jax.block_until_ready(out)

    ref = jax.block_until_ready(_reference(x, w1, b1, w2, b2))
    np.testing.assert_allclose(np.asarray(out), np.asarray(ref),
                               rtol=1e-4, atol=1e-4)
    print("KERNEL_OK")
</pallas_src>

<mosaic_0001>
module attributes {stable_mosaic.version = 11 : i64} {
  func.func @kernel(%arg0: i32, %arg1: memref<1x4x256xf32, #tpu.memory_space<vmem>>, %arg2: memref<4x36xf32, #tpu.memory_space<vmem>>, %arg3: memref<4x36xf32, #tpu.memory_space<vmem>>, %arg4: memref<1x4x256xf32, #tpu.memory_space<vmem>>, %arg5: memref<4x324xf32, #tpu.memory_space<vmem>>) attributes {dimension_semantics = [#tpu.dimension_semantics<parallel>], iteration_bounds = array<i64: 2>, scalar_prefetch = 0 : i64, scratch_operands = 1 : i64, tpu.core_type = #tpu.core_type<tc>, window_params = [{transform_indices = @transform_0, window_bounds = array<i64: 1, 4, 256>}, {pipeline_mode = #tpu.pipeline_mode<synchronous>, transform_indices = @transform_1, window_bounds = array<i64: 4, 36>}, {pipeline_mode = #tpu.pipeline_mode<synchronous>, transform_indices = @transform_2, window_bounds = array<i64: 4, 36>}, {transform_indices = @transform_3, window_bounds = array<i64: 1, 4, 256>}]} {
    %c0 = arith.constant 0 : index
    %c0_0 = arith.constant 0 : index
    %c0_1 = arith.constant 0 : index
    %0 = vector.load %arg1[%c0, %c0_0, %c0_1] : memref<1x4x256xf32, #tpu.memory_space<vmem>>, vector<1x4x256xf32>
    %1 = vector.shape_cast %0 : vector<1x4x256xf32> to vector<4x256xf32>
    %c0_2 = arith.constant 0 : index
    %c0_3 = arith.constant 0 : index
    %2 = vector.load %arg2[%c0_2, %c0_3] : memref<4x36xf32, #tpu.memory_space<vmem>>, vector<4x36xf32>
    %c0_4 = arith.constant 0 : index
    %c0_5 = arith.constant 0 : index
    %3 = vector.load %arg3[%c0_4, %c0_5] : memref<4x36xf32, #tpu.memory_space<vmem>>, vector<4x36xf32>
    %4 = tpu.iota {dimensions = array<i32: 1>} : vector<1x286xi32>
    %5 = arith.sitofp %4 : vector<1x286xi32> to vector<1x286xf32>
    %cst = arith.constant 0.055555556 : f32
    %6 = vector.broadcast %cst : f32 to vector<1x286xf32>
    %7 = arith.mulf %5, %6 : vector<1x286xf32>
    %8 = math.floor %7 : vector<1x286xf32>
    %cst_6 = arith.constant 1.800000e+01 : f32
    %9 = vector.broadcast %cst_6 : f32 to vector<1x286xf32>
    %10 = arith.mulf %8, %9 : vector<1x286xf32>
    %11 = arith.subf %5, %10 : vector<1x286xf32>
    %cst_7 = arith.constant 1.600000e+01 : f32
    %12 = vector.broadcast %cst_7 : f32 to vector<1x286xf32>
    %13 = arith.cmpf olt, %11, %12 : vector<1x286xf32>
    %14 = arith.extui %13 : vector<1x286xi1> to vector<1x286xi32>
    %15 = arith.sitofp %14 : vector<1x286xi32> to vector<1x286xf32>
    %cst_8 = arith.constant 0.000000e+00 : f32
    %16 = vector.broadcast %cst_8 : f32 to vector<4x324xf32>
    %c0_9 = arith.constant 0 : index
    %c0_10 = arith.constant 0 : index
    %17 = vector.load %arg5[%c0_9, %c0_10] : memref<4x324xf32, #tpu.memory_space<vmem>>, vector<4x324xf32>
    tpu.vector_store %arg5[%c0_9, %c0_10], %16 {strides = array<i32>} : memref<4x324xf32, #tpu.memory_space<vmem>>, vector<4x324xf32>,
    %18 = vector.extract_strided_slice %1 {offsets = [0, 0], sizes = [4, 16], strides = [1, 1]} : vector<4x256xf32> to vector<4x16xf32>
    %c0_11 = arith.constant 0 : index
    %c19 = arith.constant 19 : index
    %19 = vector.load %arg5[%c0_11, %c19] : memref<4x324xf32, #tpu.memory_space<vmem>>, vector<4x16xf32>
    tpu.vector_store %arg5[%c0_11, %c19], %18 {strides = array<i32>} : memref<4x324xf32, #tpu.memory_space<vmem>>, vector<4x16xf32>,
    %20 = vector.extract_strided_slice %1 {offsets = [0, 16], sizes = [4, 16], strides = [1, 1]} : vector<4x256xf32> to vector<4x16xf32>
    %c0_12 = arith.constant 0 : index
    %c37 = arith.constant 37 : index
    %21 = vector.load %arg5[%c0_12, %c37] : memref<4x324xf32, #tpu.memory_space<vmem>>, vector<4x16xf32>
    tpu.vector_store %arg5[%c0_12, %c37], %20 {strides = array<i32>} : memref<4x324xf32, #tpu.memory_space<vmem>>, vector<4x16xf32>,
    %22 = vector.extract_strided_slice %1 {offsets = [0, 32], sizes = [4, 16], strides = [1, 1]} : vector<4x256xf32> to vector<4x16xf32>
    %c0_13 = arith.constant 0 : index
    %c55 = arith.constant 55 : index
    %23 = vector.load %arg5[%c0_13, %c55] : memref<4x324xf32, #tpu.memory_space<vmem>>, vector<4x16xf32>
    tpu.vector_store %arg5[%c0_13, %c55], %22 {strides = array<i32>} : memref<4x324xf32, #tpu.memory_space<vmem>>, vector<4x16xf32>,
    %24 = vector.extract_strided_slice %1 {offsets = [0, 48], sizes = [4, 16], strides = [1, 1]} : vector<4x256xf32> to vector<4x16xf32>
    %c0_14 = arith.constant 0 : index
    %c73 = arith.constant 73 : index
    %25 = vector.load %arg5[%c0_14, %c73] : memref<4x324xf32, #tpu.memory_space<vmem>>, vector<4x16xf32>
    tpu.vector_store %arg5[%c0_14, %c73], %24 {strides = array<i32>} : memref<4x324xf32, #tpu.memory_space<vmem>>, vector<4x16xf32>,
    %26 = vector.extract_strided_slice %1 {offsets = [0, 64], sizes = [4, 16], strides = [1, 1]} : vector<4x256xf32> to vector<4x16xf32>
    %c0_15 = arith.constant 0 : index
    %c91 = arith.constant 91 : index
    %27 = vector.load %arg5[%c0_15, %c91] : memref<4x324xf32, #tpu.memory_space<vmem>>, vector<4x16xf32>
    tpu.vector_store %arg5[%c0_15, %c91], %26 {strides = array<i32>} : memref<4x324xf32, #tpu.memory_space<vmem>>, vector<4x16xf32>,
    %28 = vector.extract_strided_slice %1 {offsets = [0, 80], sizes = [4, 16], strides = [1, 1]} : vector<4x256xf32> to vector<4x16xf32>
    %c0_16 = arith.constant 0 : index
    %c109 = arith.constant 109 : index
    %29 = vector.load %arg5[%c0_16, %c109] : memref<4x324xf32, #tpu.memory_space<vmem>>, vector<4x16xf32>
    tpu.vector_store %arg5[%c0_16, %c109], %28 {strides = array<i32>} : memref<4x324xf32, #tpu.memory_space<vmem>>, vector<4x16xf32>,
    %30 = vector.extract_strided_slice %1 {offsets = [0, 96], sizes = [4, 16], strides = [1, 1]} : vector<4x256xf32> to vector<4x16xf32>
    %c0_17 = arith.constant 0 : index
    %c127 = arith.constant 127 : index
    %31 = vector.load %arg5[%c0_17, %c127] : memref<4x324xf32, #tpu.memory_space<vmem>>, vector<4x16xf32>
    tpu.vector_store %arg5[%c0_17, %c127], %30 {strides = array<i32>} : memref<4x324xf32, #tpu.memory_space<vmem>>, vector<4x16xf32>,
    %32 = vector.extract_strided_slice %1 {offsets = [0, 112], sizes = [4, 16], strides = [1, 1]} : vector<4x256xf32> to vector<4x16xf32>
    %c0_18 = arith.constant 0 : index
    %c145 = arith.constant 145 : index
    %33 = vector.load %arg5[%c0_18, %c145] : memref<4x324xf32, #tpu.memory_space<vmem>>, vector<4x16xf32>
    tpu.vector_store %arg5[%c0_18, %c145], %32 {strides = array<i32>} : memref<4x324xf32, #tpu.memory_space<vmem>>, vector<4x16xf32>,
    %34 = vector.extract_strided_slice %1 {offsets = [0, 128], sizes = [4, 16], strides = [1, 1]} : vector<4x256xf32> to vector<4x16xf32>
    %c0_19 = arith.constant 0 : index
    %c163 = arith.constant 163 : index
    %35 = vector.load %arg5[%c0_19, %c163] : memref<4x324xf32, #tpu.memory_space<vmem>>, vector<4x16xf32>
    tpu.vector_store %arg5[%c0_19, %c163], %34 {strides = array<i32>} : memref<4x324xf32, #tpu.memory_space<vmem>>, vector<4x16xf32>,
    %36 = vector.extract_strided_slice %1 {offsets = [0, 144], sizes = [4, 16], strides = [1, 1]} : vector<4x256xf32> to vector<4x16xf32>
    %c0_20 = arith.constant 0 : index
    %c181 = arith.constant 181 : index
    %37 = vector.load %arg5[%c0_20, %c181] : memref<4x324xf32, #tpu.memory_space<vmem>>, vector<4x16xf32>
    tpu.vector_store %arg5[%c0_20, %c181], %36 {strides = array<i32>} : memref<4x324xf32, #tpu.memory_space<vmem>>, vector<4x16xf32>,
    %38 = vector.extract_strided_slice %1 {offsets = [0, 160], sizes = [4, 16], strides = [1, 1]} : vector<4x256xf32> to vector<4x16xf32>
    %c0_21 = arith.constant 0 : index
    %c199 = arith.constant 199 : index
    %39 = vector.load %arg5[%c0_21, %c199] : memref<4x324xf32, #tpu.memory_space<vmem>>, vector<4x16xf32>
    tpu.vector_store %arg5[%c0_21, %c199], %38 {strides = array<i32>} : memref<4x324xf32, #tpu.memory_space<vmem>>, vector<4x16xf32>,
    %40 = vector.extract_strided_slice %1 {offsets = [0, 176], sizes = [4, 16], strides = [1, 1]} : vector<4x256xf32> to vector<4x16xf32>
    %c0_22 = arith.constant 0 : index
    %c217 = arith.constant 217 : index
    %41 = vector.load %arg5[%c0_22, %c217] : memref<4x324xf32, #tpu.memory_space<vmem>>, vector<4x16xf32>
    tpu.vector_store %arg5[%c0_22, %c217], %40 {strides = array<i32>} : memref<4x324xf32, #tpu.memory_space<vmem>>, vector<4x16xf32>,
    %42 = vector.extract_strided_slice %1 {offsets = [0, 192], sizes = [4, 16], strides = [1, 1]} : vector<4x256xf32> to vector<4x16xf32>
    %c0_23 = arith.constant 0 : index
    %c235 = arith.constant 235 : index
    %43 = vector.load %arg5[%c0_23, %c235] : memref<4x324xf32, #tpu.memory_space<vmem>>, vector<4x16xf32>
    tpu.vector_store %arg5[%c0_23, %c235], %42 {strides = array<i32>} : memref<4x324xf32, #tpu.memory_space<vmem>>, vector<4x16xf32>,
    %44 = vector.extract_strided_slice %1 {offsets = [0, 208], sizes = [4, 16], strides = [1, 1]} : vector<4x256xf32> to vector<4x16xf32>
    %c0_24 = arith.constant 0 : index
    %c253 = arith.constant 253 : index
    %45 = vector.load %arg5[%c0_24, %c253] : memref<4x324xf32, #tpu.memory_space<vmem>>, vector<4x16xf32>
    tpu.vector_store %arg5[%c0_24, %c253], %44 {strides = array<i32>} : memref<4x324xf32, #tpu.memory_space<vmem>>, vector<4x16xf32>,
    %46 = vector.extract_strided_slice %1 {offsets = [0, 224], sizes = [4, 16], strides = [1, 1]} : vector<4x256xf32> to vector<4x16xf32>
    %c0_25 = arith.constant 0 : index
    %c271 = arith.constant 271 : index
    %47 = vector.load %arg5[%c0_25, %c271] : memref<4x324xf32, #tpu.memory_space<vmem>>, vector<4x16xf32>
    tpu.vector_store %arg5[%c0_25, %c271], %46 {strides = array<i32>} : memref<4x324xf32, #tpu.memory_space<vmem>>, vector<4x16xf32>,
    %48 = vector.extract_strided_slice %1 {offsets = [0, 240], sizes = [4, 16], strides = [1, 1]} : vector<4x256xf32> to vector<4x16xf32>
    %c0_26 = arith.constant 0 : index
    %c289 = arith.constant 289 : index
    %49 = vector.load %arg5[%c0_26, %c289] : memref<4x324xf32, #tpu.memory_space<vmem>>, vector<4x16xf32>
    tpu.vector_store %arg5[%c0_26, %c289], %48 {strides = array<i32>} : memref<4x324xf32, #tpu.memory_space<vmem>>, vector<4x16xf32>,
    %c0_27 = arith.constant 0 : index
    %c0_28 = arith.constant 0 : index
    %50 = vector.load %arg5[%c0_27, %c0_28] : memref<4x324xf32, #tpu.memory_space<vmem>>, vector<4x324xf32>
    %51 = vector.extract_strided_slice %50 {offsets = [0, 0], sizes = [4, 286], strides = [1, 1]} : vector<4x324xf32> to vector<4x286xf32>
    %52 = vector.extract_strided_slice %50 {offsets = [0, 1], sizes = [4, 286], strides = [1, 1]} : vector<4x324xf32> to vector<4x286xf32>
    %53 = vector.extract_strided_slice %50 {offsets = [0, 2], sizes = [4, 286], strides = [1, 1]} : vector<4x324xf32> to vector<4x286xf32>
    %54 = vector.extract_strided_slice %50 {offsets = [0, 18], sizes = [4, 286], strides = [1, 1]} : vector<4x324xf32> to vector<4x286xf32>
    %55 = vector.extract_strided_slice %50 {offsets = [0, 19], sizes = [4, 286], strides = [1, 1]} : vector<4x324xf32> to vector<4x286xf32>
    %56 = vector.extract_strided_slice %50 {offsets = [0, 20], sizes = [4, 286], strides = [1, 1]} : vector<4x324xf32> to vector<4x286xf32>
    %57 = vector.extract_strided_slice %50 {offsets = [0, 36], sizes = [4, 286], strides = [1, 1]} : vector<4x324xf32> to vector<4x286xf32>
    %58 = vector.extract_strided_slice %50 {offsets = [0, 37], sizes = [4, 286], strides = [1, 1]} : vector<4x324xf32> to vector<4x286xf32>
    %59 = vector.extract_strided_slice %50 {offsets = [0, 38], sizes = [4, 286], strides = [1, 1]} : vector<4x324xf32> to vector<4x286xf32>
    %60 = tpu.concatenate %51, %52, %53, %54, %55, %56, %57, %58, %59 in 0 : vector<4x286xf32>, vector<4x286xf32>, vector<4x286xf32>, vector<4x286xf32>, vector<4x286xf32>, vector<4x286xf32>, vector<4x286xf32>, vector<4x286xf32>, vector<4x286xf32> -> vector<36x286xf32>
    %cst_29 = arith.constant dense<0.000000e+00> : vector<4x286xf32>
    %61 = tpu.matmul %2, %60, %cst_29 {dimension_numbers = #tpu.dot_dimension_numbers<[1], [0], [0], [1], [0, 0, 1, 1], [], []>} : vector<4x36xf32>, vector<36x286xf32>, vector<4x286xf32> -> vector<4x286xf32>
    %62 = vector.broadcast %15 : vector<1x286xf32> to vector<4x286xf32>
    %63 = arith.mulf %61, %62 : vector<4x286xf32>
    %cst_30 = arith.constant dense<0.000000e+00> : vector<4xf32>
    %64 = vector.multi_reduction <add>, %63, %cst_30 [1] : vector<4x286xf32> to vector<4xf32>
    %65 = vector.shape_cast %64 : vector<4xf32> to vector<4x1xf32>
    %66 = arith.mulf %63, %61 : vector<4x286xf32>
    %cst_31 = arith.constant dense<0.000000e+00> : vector<4xf32>
    %67 = vector.multi_reduction <add>, %66, %cst_31 [1] : vector<4x286xf32> to vector<4xf32>
    %68 = vector.shape_cast %67 : vector<4xf32> to vector<4x1xf32>
    %cst_32 = arith.constant 3.906250e-03 : f32
    %69 = vector.broadcast %cst_32 : f32 to vector<4x1xf32>
    %70 = arith.mulf %65, %69 : vector<4x1xf32>
    %cst_33 = arith.constant 3.906250e-03 : f32
    %71 = vector.broadcast %cst_33 : f32 to vector<4x1xf32>
    %72 = arith.mulf %68, %71 : vector<4x1xf32>
    %73 = arith.mulf %70, %70 : vector<4x1xf32>
    %74 = arith.subf %72, %73 : vector<4x1xf32>
    %cst_34 = arith.constant 0.000000e+00 : f32
    %75 = vector.broadcast %cst_34 : f32 to vector<4x1xf32>
    %76 = arith.maximumf %74, %75 : vector<4x1xf32>
    %77 = vector.broadcast %70 : vector<4x1xf32> to vector<4x286xf32>
    %78 = arith.subf %61, %77 : vector<4x286xf32>
    %cst_35 = arith.constant 9.99999974E-6 : f32
    %79 = vector.broadcast %cst_35 : f32 to vector<4x1xf32>
    %80 = arith.addf %76, %79 : vector<4x1xf32>
    %81 = math.rsqrt %80 : vector<4x1xf32>
    %82 = vector.broadcast %81 : vector<4x1xf32> to vector<4x286xf32>
    %83 = arith.mulf %78, %82 : vector<4x286xf32>
    %cst_36 = arith.constant 0.000000e+00 : f32
    %84 = vector.broadcast %cst_36 : f32 to vector<4x286xf32>
    %85 = arith.maximumf %83, %84 : vector<4x286xf32>
    %86 = vector.broadcast %15 : vector<1x286xf32> to vector<4x286xf32>
    %87 = arith.mulf %85, %86 : vector<4x286xf32>
    %c0_37 = arith.constant 0 : index
    %c19_38 = arith.constant 19 : index
    %88 = vector.load %arg5[%c0_37, %c19_38] : memref<4x324xf32, #tpu.memory_space<vmem>>, vector<4x286xf32>
    tpu.vector_store %arg5[%c0_37, %c19_38], %87 {strides = array<i32>} : memref<4x324xf32, #tpu.memory_space<vmem>>, vector<4x286xf32>,
    %c0_39 = arith.constant 0 : index
    %c0_40 = arith.constant 0 : index
    %89 = vector.load %arg5[%c0_39, %c0_40] : memref<4x324xf32, #tpu.memory_space<vmem>>, vector<4x324xf32>
    %90 = vector.extract_strided_slice %89 {offsets = [0, 0], sizes = [4, 286], strides = [1, 1]} : vector<4x324xf32> to vector<4x286xf32>
    %91 = vector.extract_strided_slice %89 {offsets = [0, 1], sizes = [4, 286], strides = [1, 1]} : vector<4x324xf32> to vector<4x286xf32>
    %92 = vector.extract_strided_slice %89 {offsets = [0, 2], sizes = [4, 286], strides = [1, 1]} : vector<4x324xf32> to vector<4x286xf32>
    %93 = vector.extract_strided_slice %89 {offsets = [0, 18], sizes = [4, 286], strides = [1, 1]} : vector<4x324xf32> to vector<4x286xf32>
    %94 = vector.extract_strided_slice %89 {offsets = [0, 19], sizes = [4, 286], strides = [1, 1]} : vector<4x324xf32> to vector<4x286xf32>
    %95 = vector.extract_strided_slice %89 {offsets = [0, 20], sizes = [4, 286], strides = [1, 1]} : vector<4x324xf32> to vector<4x286xf32>
    %96 = vector.extract_strided_slice %89 {offsets = [0, 36], sizes = [4, 286], strides = [1, 1]} : vector<4x324xf32> to vector<4x286xf32>
    %97 = vector.extract_strided_slice %89 {offsets = [0, 37], sizes = [4, 286], strides = [1, 1]} : vector<4x324xf32> to vector<4x286xf32>
    %98 = vector.extract_strided_slice %89 {offsets = [0, 38], sizes = [4, 286], strides = [1, 1]} : vector<4x324xf32> to vector<4x286xf32>
    %99 = tpu.concatenate %90, %91, %92, %93, %94, %95, %96, %97, %98 in 0 : vector<4x286xf32>, vector<4x286xf32>, vector<4x286xf32>, vector<4x286xf32>, vector<4x286xf32>, vector<4x286xf32>, vector<4x286xf32>, vector<4x286xf32>, vector<4x286xf32> -> vector<36x286xf32>
    %cst_41 = arith.constant dense<0.000000e+00> : vector<4x286xf32>
    %100 = tpu.matmul %3, %99, %cst_41 {dimension_numbers = #tpu.dot_dimension_numbers<[1], [0], [0], [1], [0, 0, 1, 1], [], []>} : vector<4x36xf32>, vector<36x286xf32>, vector<4x286xf32> -> vector<4x286xf32>
    %101 = vector.broadcast %15 : vector<1x286xf32> to vector<4x286xf32>
    %102 = arith.mulf %100, %101 : vector<4x286xf32>
    %cst_42 = arith.constant dense<0.000000e+00> : vector<4xf32>
    %103 = vector.multi_reduction <add>, %102, %cst_42 [1] : vector<4x286xf32> to vector<4xf32>
    %104 = vector.shape_cast %103 : vector<4xf32> to vector<4x1xf32>
    %105 = arith.mulf %102, %100 : vector<4x286xf32>
    %cst_43 = arith.constant dense<0.000000e+00> : vector<4xf32>
    %106 = vector.multi_reduction <add>, %105, %cst_43 [1] : vector<4x286xf32> to vector<4xf32>
    %107 = vector.shape_cast %106 : vector<4xf32> to vector<4x1xf32>
    %cst_44 = arith.constant 3.906250e-03 : f32
    %108 = vector.broadcast %cst_44 : f32 to vector<4x1xf32>
    %109 = arith.mulf %104, %108 : vector<4x1xf32>
    %cst_45 = arith.constant 3.906250e-03 : f32
    %110 = vector.broadcast %cst_45 : f32 to vector<4x1xf32>
    %111 = arith.mulf %107, %110 : vector<4x1xf32>
    %112 = arith.mulf %109, %109 : vector<4x1xf32>
    %113 = arith.subf %111, %112 : vector<4x1xf32>
    %cst_46 = arith.constant 0.000000e+00 : f32
    %114 = vector.broadcast %cst_46 : f32 to vector<4x1xf32>
    %115 = arith.maximumf %113, %114 : vector<4x1xf32>
    %116 = vector.broadcast %109 : vector<4x1xf32> to vector<4x286xf32>
    %117 = arith.subf %100, %116 : vector<4x286xf32>
    %cst_47 = arith.constant 9.99999974E-6 : f32
    %118 = vector.broadcast %cst_47 : f32 to vector<4x1xf32>
    %119 = arith.addf %115, %118 : vector<4x1xf32>
    %120 = math.rsqrt %119 : vector<4x1xf32>
    %121 = vector.broadcast %120 : vector<4x1xf32> to vector<4x286xf32>
    %122 = arith.mulf %117, %121 : vector<4x286xf32>
    %123 = vector.extract_strided_slice %122 {offsets = [0, 0], sizes = [4, 16], strides = [1, 1]} : vector<4x286xf32> to vector<4x16xf32>
    %124 = vector.extract_strided_slice %122 {offsets = [0, 18], sizes = [4, 16], strides = [1, 1]} : vector<4x286xf32> to vector<4x16xf32>
    %125 = vector.extract_strided_slice %122 {offsets = [0, 36], sizes = [4, 16], strides = [1, 1]} : vector<4x286xf32> to vector<4x16xf32>
    %126 = vector.extract_strided_slice %122 {offsets = [0, 54], sizes = [4, 16], strides = [1, 1]} : vector<4x286xf32> to vector<4x16xf32>
    %127 = vector.extract_strided_slice %122 {offsets = [0, 72], sizes = [4, 16], strides = [1, 1]} : vector<4x286xf32> to vector<4x16xf32>
    %128 = vector.extract_strided_slice %122 {offsets = [0, 90], sizes = [4, 16], strides = [1, 1]} : vector<4x286xf32> to vector<4x16xf32>
    %129 = vector.extract_strided_slice %122 {offsets = [0, 108], sizes = [4, 16], strides = [1, 1]} : vector<4x286xf32> to vector<4x16xf32>
    %130 = vector.extract_strided_slice %122 {offsets = [0, 126], sizes = [4, 16], strides = [1, 1]} : vector<4x286xf32> to vector<4x16xf32>
    %131 = vector.extract_strided_slice %122 {offsets = [0, 144], sizes = [4, 16], strides = [1, 1]} : vector<4x286xf32> to vector<4x16xf32>
    %132 = vector.extract_strided_slice %122 {offsets = [0, 162], sizes = [4, 16], strides = [1, 1]} : vector<4x286xf32> to vector<4x16xf32>
    %133 = vector.extract_strided_slice %122 {offsets = [0, 180], sizes = [4, 16], strides = [1, 1]} : vector<4x286xf32> to vector<4x16xf32>
    %134 = vector.extract_strided_slice %122 {offsets = [0, 198], sizes = [4, 16], strides = [1, 1]} : vector<4x286xf32> to vector<4x16xf32>
    %135 = vector.extract_strided_slice %122 {offsets = [0, 216], sizes = [4, 16], strides = [1, 1]} : vector<4x286xf32> to vector<4x16xf32>
    %136 = vector.extract_strided_slice %122 {offsets = [0, 234], sizes = [4, 16], strides = [1, 1]} : vector<4x286xf32> to vector<4x16xf32>
    %137 = vector.extract_strided_slice %122 {offsets = [0, 252], sizes = [4, 16], strides = [1, 1]} : vector<4x286xf32> to vector<4x16xf32>
    %138 = vector.extract_strided_slice %122 {offsets = [0, 270], sizes = [4, 16], strides = [1, 1]} : vector<4x286xf32> to vector<4x16xf32>
    %139 = tpu.concatenate %123, %124, %125, %126, %127, %128, %129, %130, %131, %132, %133, %134, %135, %136, %137, %138 in 1 : vector<4x16xf32>, vector<4x16xf32>, vector<4x16xf32>, vector<4x16xf32>, vector<4x16xf32>, vector<4x16xf32>, vector<4x16xf32>, vector<4x16xf32>, vector<4x16xf32>, vector<4x16xf32>, vector<4x16xf32>, vector<4x16xf32>, vector<4x16xf32>, vector<4x16xf32>, vector<4x16xf32>, vector<4x16xf32> -> vector<4x256xf32>
    %140 = arith.addf %1, %139 : vector<4x256xf32>
    %c0_48 = arith.constant 0 : index
    %c0_49 = arith.constant 0 : index
    %c0_50 = arith.constant 0 : index
    %141 = vector.load %arg4[%c0_48, %c0_49, %c0_50] : memref<1x4x256xf32, #tpu.memory_space<vmem>>, vector<1x4x256xf32>
    %142 = vector.shape_cast %141 : vector<1x4x256xf32> to vector<4x256xf32>
    %143 = vector.shape_cast %140 : vector<4x256xf32> to vector<1x4x256xf32>
    tpu.vector_store %arg4[%c0_48, %c0_49, %c0_50], %143 {strides = array<i32>} : memref<1x4x256xf32, #tpu.memory_space<vmem>>, vector<1x4x256xf32>,
    return
  }
  func.func @transform_0(%arg0: i32) -> (i32, i32, i32) {
    %c0_i32 = arith.constant 0 : i32
    %c0_i32_0 = arith.constant 0 : i32
    %c0_i32_1 = arith.constant 0 : i32
    return %arg0, %c0_i32, %c0_i32_0 : i32, i32, i32
  }
  func.func @transform_1(%arg0: i32) -> (i32, i32) {
    %c0_i32 = arith.constant 0 : i32
    %c0_i32_0 = arith.constant 0 : i32
    %c0_i32_1 = arith.constant 0 : i32
    return %c0_i32, %c0_i32_0 : i32, i32
  }
  func.func @transform_2(%arg0: i32) -> (i32, i32) {
    %c0_i32 = arith.constant 0 : i32
    %c0_i32_0 = arith.constant 0 : i32
    %c0_i32_1 = arith.constant 0 : i32
    return %c0_i32, %c0_i32_0 : i32, i32
  }
  func.func @transform_3(%arg0: i32) -> (i32, i32, i32) {
    %c0_i32 = arith.constant 0 : i32
    %c0_i32_0 = arith.constant 0 : i32
    %c0_i32_1 = arith.constant 0 : i32
    return %arg0, %c0_i32, %c0_i32_0 : i32, i32, i32
  }
}

</mosaic_0001>

<bundles_post_ra>
// kernel: tpu_custom_call.1
= control target key start
LH: loop header
LB: loop body
LE: loop exit
PB: predicated region body
PF: predicated region fallthrough
CT: control target
= control target key end

     0   :  { %8 = vsyncpa [#allocation4], 0  ;;  %s1996_s0 = inlined_call_operand.hbm [shape: f32[2,4,256], index: 0, kind: input, shape index: {}]   ;;  %s1997_s1 = inlined_call_operand.hbm [shape: f32[4,36], index: 1, kind: input, shape index: {}]   ;;  %s1998_s2 = inlined_call_operand.vmem [shape: f32[4,36], index: 2, kind: input, shape index: {}]   ;;  %s1999_s3 = inlined_call_operand.hbm [shape: f32[2,4,256], index: 3, kind: output, shape index: {}]  }
   0x1   :  { %10 = vsyncpa [#allocation4 + $0x1], 0 }
   0x2   :  { %11 = vsyncpa [#allocation7], 0 }
   0x3   :  { %12 = vsyncpa [#allocation5], 0 }
   0x4   :  { %14 = vsyncpa [#allocation5 + $0x1], 0  ;;  %s1599_s12 = smov 0   ;;  %s1601_s13 = smov 0  }
   0x5   :  { %s1603_s14 = smov 0   ;;  %s1605_s15 = smov 0  }
   0x6 LB: > { %s1620_s16 = sadd.s32 4294967295, %s1535_s15   ;;  %s1133_s17 = sadd.s32 4294967294, %s1535_s15   ;;  %s1535_s15 = sphi %s1605_s15, %s2023_s15   ;;  %s1531_s14 = sphi %s1603_s14, %s2022_s14   ;;  %s1527_s13 = sphi %s1601_s13, %s2021_s13   ;;  %s1523_s12 = sphi %s1599_s12, %s2020_s12  }
   0x7   : > { %p40_p0 = scmp.ne.s32.totalorder %s1527_s13, %s1523_s12  ;;  %p2000_p1 = scmp.eq.s32.totalorder %s1620_s16, 0 }
   0x8   : > { %p112_p3 = scmp.eq.s32.totalorder %s1133_s17, 1  ;;  %p1134_p5 = scmp.ge.s32.totalorder %s1535_s15, 1 }
   0x9   : > { %p1629_p4 = por %p2000_p1, %p40_p0  ;;  %p119_p7 = scmp.lt.s32.totalorder %s1535_s15, 3 }
   0xa   : > { %p1634_p6 = por %p112_p3, %p40_p0  ;;  %s1537_s21 = smov [#allocation6]  }
   0xb   : > { %s2003_s18 = scalar_select %p1629_p4, 1, 0 }
   0xc   : > { %s2004_s19 = scalar_select %p1634_p6, 1, 0 }
   0xd   : > { %p1639_p8 = pnand %p1134_p5, %p119_p7  ;;  %s132_s22 = sshll.u32 %s1537_s21, 4  ;;  %s133_s22 = int_to_ptr.vmem [resolvable:$true] %s132_s22 }
   0xe   : > { %s1647_s23 = sadd.s32 1, %s1535_s15   ;;  %s27_s27 = sadd.s32 1, %s1531_s14 }
   0xf   : > { %s2005_s20 = scalar_select %p1639_p8, 1, 0 }
  0x10   : > { %p1238_p10 = pneg %p1639_p8  ;;  %s24_s25 = ssub.s32 %s1535_s15, %s1647_s23 }
  0x11   : > { %p1657_p12 = scmp.eq.s32.totalorder %s24_s25, 0  ;;  %s1407_s30 = scalar_lea.hbm %s1997_s1, 64 }
  0x12   : > { %p1651_p11 = pnand %p1238_p10, %p2000_p1  ;;  %p1408_p0 = scmp.ne.s32.totalorder %s1997_s1, %s1407_s30 }
  0x13   : > { %s2007_s26 = scalar_select %p1657_p12, 1, 0 }
  0x14   : > { %p1409_p3 = pneg %p1651_p11  ;;  %p1414_p10 = scmp.lt.u32.totalorder %s1407_s30, %s1997_s1 }
  0x16   : > { %p1410_p5 = pnand %p1409_p3, %p1408_p0 }
  0x18   : > { %p1411_p7 = pneg %p1410_p5 }
  0x1a   : > { %p1416_p9 = pnand %p1414_p10, %p1411_p7 }
  0x1c   : > { %1419 = shalt.err (!%p1416_p9)
}
  0x1d   : > { %s1420_s8 = scalar_lea.vmem %s133_s22, 64  ;;  %p1428_p6 = scmp.lt.s32.totalorder %s133_s22, %s133_s22 }
  0x1e   : > { %p1421_p1 = scmp.ne.s32.totalorder %s133_s22, %s1420_s8  ;;  %p1429_p4 = scmp.lt.s32.totalorder %s1420_s8, %s1420_s8 }
  0x20   : > { %p1423_p2 = pnand %p1421_p1, %p1409_p3  ;;  %p1430_p8 = por %p1429_p4, %p1428_p6 }
  0x22   : > { %p1424_p13 = pneg %p1423_p2 }
  0x24   : > { %p1431_p12 = pnand %p1430_p8, %p1424_p13 }
  0x26   : > { %1434 = shalt.err (!%p1431_p12)
}
  0x27   : > { %1241 = dma.hbm_to_vmem [thread:$0]  (!%p1651_p11), %s1997_s1, 64, %s133_s22, [#allocation7]  }
  0x28   : > { %p2008_p1 = scmp.ne.s32.totalorder %s2007_s26, 0  ;;  %p35_p2 = scmp.eq.s32.totalorder %s1535_s15, 0 }
  0x29   : > { %p2009_p4 = scmp.ne.s32.totalorder %s1531_s14, %s1527_s13  ;;  %p2010_p6 = scmp.eq.s32.totalorder %s1620_s16, 1 }
  0x2a   : > { %s1683_s11 = scalar_select %p2008_p1, %s1531_s14, %s27_s27  }
  0x2b   : > { %p1691_p8 = por %p2010_p6, %p2009_p4  ;;  %p1251_p9 = scmp.lt.s32.totalorder %s1535_s15, 2 }
  0x2c   : > { %s146_s21 = sand.u32 1, %s1531_s14   ;;  %p2012_p12 = pmov %p2009_p4 }
  0x2d   : > { %s1137_s24 = sshll.u32 %s146_s21, 3  ;;  %s1162_s25 = sshll.u32 %s1535_s15, 7 }
  0x2e   : > { %p36_p13 = por %p35_p2, %p2012_p12  ;;  %s1704_s22 = scalar_lea.hbm %s1996_s0, %s1162_s25 }
  0x2f   : > { %s150_s26 = scalar_lea.vmem [#allocation3], %s1137_s24  ;;  %s147_s4 = scalar_lea.sflag [#allocation4], %s146_s21 }
  0x30   : > { %s158_s27 = sshll.u32 %s150_s26, 4  ;;  %p1706_p11 = pnand %p1251_p9, %p36_p13  ;;  %s1710_s27 = int_to_ptr.vmem [resolvable:$true] %s158_s27 }
  0x31   : > { %s1435_s5 = scalar_lea.hbm %s1704_s22, 128  ;;  %s1440_s8 = scalar_lea.hbm %s1996_s0, 256 }
  0x32   : > { %p1436_p0 = scmp.ne.s32.totalorder %s1704_s22, %s1435_s5  ;;  %p1437_p3 = pneg %p1706_p11 }
  0x33   : > { %p1441_p10 = scmp.lt.u32.totalorder %s1704_s22, %s1996_s0  ;;  %p1442_p1 = scmp.lt.u32.totalorder %s1440_s8, %s1435_s5 }
  0x34   : > { %p1438_p5 = pnand %p1437_p3, %p1436_p0  ;;  %p1444_p4 = scmp.lt.u32.totalorder %s1435_s5, %s1704_s22 }
  0x35   : > { %p1443_p2 = por %p1442_p1, %p1441_p10 }
  0x36   : > { %p1439_p7 = pneg %p1438_p5 }
  0x37   : > { %p1445_p6 = por %p1444_p4, %p1443_p2 }
  0x39   : > { %p1446_p9 = pnand %p1445_p6, %p1439_p7 }
  0x3b   : > { %1449 = shalt.err (!%p1446_p9)
}
  0x3c   : > { %s1450_s21 = scalar_lea.vmem %s1710_s27, 128  ;;  %s1538_s24 = smov [#allocation3]  }
  0x3d   : > { %p1451_p12 = scmp.ne.s32.totalorder %s1710_s27, %s1450_s21  ;;  %s1455_s25 = sshll.u32 %s1538_s24, 4  ;;  %s1456_s25 = int_to_ptr.vmem [resolvable:$false] %s1455_s25 }
  0x3e   : > { %s1457_s28 = scalar_lea.vmem %s1456_s25, 256  ;;  %p1458_p5 = scmp.lt.s32.totalorder %s1710_s27, %s1456_s25 }
  0x3f   : > { %p1453_p13 = pnand %p1451_p12, %p1437_p3  ;;  %p1459_p10 = scmp.lt.s32.totalorder %s1457_s28, %s1450_s21 }
  0x41   : > { %p1454_p0 = pneg %p1453_p13  ;;  %p1460_p1 = por %p1459_p10, %p1458_p5 }
  0x43   : > { %p1461_p2 = pnand %p1460_p1, %p1454_p0 }
  0x45   : > { %1464 = shalt.err (!%p1461_p2)
}
  0x46   : > { %1245 = dma.hbm_to_vmem [thread:$0]  (!%p1706_p11), %s1704_s22, 128, %s1710_s27, %s147_s4  }
  0x47   : > { %p2014_p7 = scmp.ne.s32.totalorder %s2005_s20, 0 }
  0x48   : > { %s1740_s29 = sand.u32 (!%p2014_p7), 1, %s1527_s13   ;;  %p2015_p3 = scmp.ne.s32.totalorder (!%p2014_p7), %s2003_s18, 0 }
  0x49   : > { %167 = sbr.rel (%p2014_p7) target bundleno = 1610 (0x64a), region = 32  ;;  %s1141_s26 = sshll.u32 (!%p2014_p7), %s1740_s29, 3 }
  0x4a   : > { %s170_s5 = scalar_lea.sflag (!%p2014_p7), [#allocation4], %s1740_s29  ;;  %s1746_s6 = scalar_lea.vmem (!%p2014_p7), [#allocation3], %s1141_s26 }
  0x50   : > { %1510 = dma.done.wait (%p2015_p3), %s170_s5, 128  }
  0x51   : > { %1512 = vsyncadd (%p2015_p3), %s170_s5, 4294967168  ;;  %p2016_p11 = scmp.eq.s32.totalorder %s1620_s16, 0 }
  0x53   : > { %1514 = dma.done.wait (%p2016_p11), [#allocation7], 64   ;;  %p2017_p4 = pmov %p2016_p11 }
  0x54   : > { %v1539_v0 = vmov 0.0   ;;  %v200_v1 = vld [vmem:[%s1746_s6] sm:$0xff]  ;;  %s1540_s20 = smov 23   ;;  %s1541_s22 = smov 19   ;;  %vm232_vm0 = vcmask 551936   ;;  %vm238_vm1 = vcmask 281752  }
  0x55   : > { %1516 = vsyncadd (%p2017_p4), [#allocation7], 4294967232  ;;  %231 = vst [vmem:[#allocation2] sm:$0xff] %v1539_v0  ;;  %530 = vmatprep.mubr.f32.mxu0 %v1539_v0  ;;  %245 = vrot.lane.b32.xlu1 %v200_v1, %s1540_s20  ;;  %s1542_s18 = smov 25   ;;  %s1543_s27 = smov 21   ;;  %vm243_vm2 = vcmask 429352  }
  0x56   : > { %235 = vrot.lane.b32.xlu0 %v200_v1, %s1541_s22  ;;  %s1544_s30 = smov 27   ;;  %s1545_s4 = smov 31   ;;  %233 = vst.msk [vmem:[#allocation2 + $0x8] sm:$0xf] %vm232_vm0, %v1539_v0  ;;  %vm248_vm3 = vcmask 576952   ;;  %vm253_vm4 = vcmask 724552  }
  0x57   : > { %s1546_s7 = smov 35   ;;  %s1547_s8 = smov 29   ;;  %vm258_vm5 = vcmask 872152   ;;  %vm271_vm6 = vcmask 1044472   ;;  %vm272_vm7 = vcmask 121860   ;;  %vm268_vm8 = vcmask 252928  }
  0x58   : > { %s1548_s9 = smov 33   ;;  %s1549_s10 = smov 37   ;;  %vm263_vm9 = vcmask 1019752   ;;  %vm273_vm10 = vmor %vm272_vm7, %vm271_vm6  ;;  %vm283_vm11 = vcmask 285696   ;;  %vm278_vm12 = vcmask 265352   ;;  %vm286_vm13 = vcmask 412952  }
  0x59   : > { %250 = vrot.lane.b32.xlu1 %v200_v1, %s1542_s18  ;;  %s1550_s21 = smov 41   ;;  %s1551_s24 = smov 39   ;;  %vm291_vm14 = vcmask 302080   ;;  %vm294_vm15 = vcmask 560552   ;;  %vm307_vm0 = vcmask 334848   ;;  %vm323_vm6 = vcmask 367616  }
  0x5a   : > { %240 = vrot.lane.b32.xlu0 %v200_v1, %s1543_s27  ;;  %s1552_s25 = smov 45   ;;  %s1553_s28 = smov 43   ;;  %vm315_vm7 = vcmask 351232   ;;  %v1559_v40 = vmov 0.0|0.0  }
  0x5b   : > { %s1554_s5 = smov 47   ;;  %s1555_s20 = smov 49   ;;  %1210 = vmatprep.subr.bf16.mxu1 %v1559_v40 }
  0x5c   : > { %s1556_s18 = smov 126   ;;  %s1557_s27 = smov 109  }
  0x5d   : > { %255 = vrot.lane.b32.xlu1 %v200_v1, %s1544_s30  ;;  %s1558_s30 = smov 127  }
  0x5e   : > { %265 = vrot.lane.b32.xlu0 %v200_v1, %s1545_s4  ;;  %s1560_s4 = smov 92  }
  0x61   : > { %280 = vrot.lane.b32.xlu1 %v200_v1, %s1546_s7  ;;  %s1561_s7 = smov 110  }
  0x62   : > { %260 = vrot.lane.b32.xlu0 %v200_v1, %s1547_s8  ;;  %s1562_s8 = smov 108  }
  0x65   : > { %275 = vrot.lane.b32.xlu1 %v200_v1, %s1548_s9  ;;  %s1563_s9 = smov 91  }
  0x66   : > { %288 = vrot.lane.b32.xlu0 %v200_v1, %s1549_s10  ;;  %s1565_s10 = smov 90  }
  0x69   : > { %304 = vrot.lane.b32.xlu1 %v200_v1, %s1550_s21 }
  0x6a   : > { %296 = vrot.lane.b32.xlu0 %v200_v1, %s1551_s24  ;;  %s1566_s24 = smov 112  }
  0x6d   : > { %320 = vrot.lane.b32.xlu1 %v200_v1, %s1552_s25  ;;  %s1567_s25 = smov 124  }
  0x6e   : > { %312 = vrot.lane.b32.xlu0 %v200_v1, %s1553_s28  ;;  %s1568_s28 = smov 122  }
  0x71   : > { %336 = vrot.lane.b32.xlu1 %v200_v1, %s1555_s20  ;;  %s1570_s20 = smov 106  }
  0x72   : > { %330 = vrot.lane.b32.xlu0 %v200_v1, %s1554_s5  ;;  %s1569_s5 = smov 120  }
  0xc7   : > { %v246_v2 = vpop.permute.xlu1 %245 }
  0xc8   : > { %v236_v3 = vpop.permute.xlu0 %235 }
  0xc9   : > { %239 = vst.msk [vmem:[#allocation2] sm:$0xf] %vm238_vm1, %v236_v3  ;;  %vm299_vm1 = vcmask 318464  }
  0xcb   : > { %v251_v4 = vpop.permute.xlu1 %250 }
  0xcc   : > { %v241_v5 = vpop.permute.xlu0 %240 }
  0xcd   : > { %244 = vst.msk [vmem:[#allocation2] sm:$0xf] %vm243_vm2, %v241_v5  ;;  %vm302_vm2 = vcmask 708152  }
  0xce   : > { %249 = vst.msk [vmem:[#allocation2] sm:$0xf] %vm248_vm3, %v246_v2  ;;  %vm310_vm3 = vcmask 855752  }
  0xcf   : > { %254 = vst.msk [vmem:[#allocation2] sm:$0xf] %vm253_vm4, %v251_v4  ;;  %v256_v6 = vpop.permute.xlu1 %255  ;;  %vm326_vm4 = vcmask 1044456  }
  0xd0   : > { %v266_v7 = vpop.permute.xlu0 %265  ;;  %259 = vst.msk [vmem:[#allocation2] sm:$0xf] %vm258_vm5, %v256_v6  ;;  %vm327_vm5 = vcmask 105476  }
  0xd1   : > { %v267_v8 = vrot.slane %v266_v7, 4 }
  0xd3   : > { %v281_v9 = vpop.permute.xlu1 %280  ;;  %v269_v11 = vsel %vm268_vm8, %v267_v8, %v266_v7  ;;  %vm318_vm8 = vcmask 1003352  }
  0xd4   : > { %v261_v10 = vpop.permute.xlu0 %260  ;;  %v282_v12 = vrot.slane %v281_v9, 4 }
  0xd5   : > { %264 = vst.msk [vmem:[#allocation2] sm:$0xf] %vm263_vm9, %v261_v10  ;;  %vm328_vm9 = vmor %vm327_vm5, %vm326_vm4  ;;  %vm428_vm4 = vcmask 744448   ;;  %vm440_vm5 = vcmask 736256  }
  0xd6   : > { %274 = vst.msk [vmem:[#allocation2] sm:$0xff] %vm273_vm10, %v269_v11  ;;  %v284_v15 = vsel %vm283_vm11, %v281_v9, %v282_v12  ;;  %vm334_vm10 = vcmask 248952   ;;  %vm340_vm11 = vcmask 396552  }
  0xd7   : > { %v276_v13 = vpop.permute.xlu1 %275 }
  0xd8   : > { %v289_v14 = vpop.permute.xlu0 %288  ;;  %279 = vst.msk [vmem:[#allocation2 + $0x4] sm:$0xf] %vm278_vm12, %v276_v13  ;;  %vm1564_vm12 = vmmov 0  }
  0xd9   : > { %v290_v16 = vrot.slane %v289_v14, 4  ;;  %287 = vst.msk [vmem:[#allocation2 + $0x4] sm:$0xf] %vm286_vm13, %v284_v15  ;;  %1186 = vmatprep.mubr.msk.f32.mxu1 %vm1564_vm12, %v1539_v0  ;;  %vm368_vm13 = vcmask 1031168  }
  0xdb   : > { %v292_v17 = vsel %vm291_vm14, %v289_v14, %v290_v16  ;;  %v305_v18 = vpop.permute.xlu1 %304  ;;  %vm356_vm14 = vcmask 1039360  }
  0xdc   : > { %295 = vst.msk [vmem:[#allocation2 + $0x4] sm:$0xf] %vm294_vm15, %v292_v17  ;;  %v297_v19 = vpop.permute.xlu0 %296  ;;  %v306_v20 = vrot.slane %v305_v18, 4  ;;  %vm392_vm15 = vcmask 891904  }
  0xdd   : > { %v298_v21 = vrot.slane %v297_v19, 4 }
  0xde   : > { %v308_v22 = vsel %vm307_vm0, %v305_v18, %v306_v20  ;;  %vm404_vm0 = vcmask 883712  }
  0xdf   : > { %v300_v23 = vsel %vm299_vm1, %v297_v19, %v298_v21  ;;  %v321_v24 = vpop.permute.xlu1 %320  ;;  %vm416_vm1 = vcmask 752640  }
  0xe0   : > { %303 = vst.msk [vmem:[#allocation2 + $0x4] sm:$0xf] %vm302_vm2, %v300_v23  ;;  %v313_v25 = vpop.permute.xlu0 %312  ;;  %v322_v26 = vrot.slane %v321_v24, 4  ;;  %vm443_vm2 = vcmask 1043456  }
  0xe1   : > { %311 = vst.msk [vmem:[#allocation2 + $0x4] sm:$0xf] %vm310_vm3, %v308_v22  ;;  %v314_v27 = vrot.slane %v313_v25, 4  ;;  %vm380_vm3 = vcmask 900096  }
  0xe2   : > { %v324_v28 = vsel %vm323_vm6, %v321_v24, %v322_v26  ;;  %vm456_vm6 = vcmask 293888  }
  0xe3   : > { %v316_v29 = vsel %vm315_vm7, %v313_v25, %v314_v27  ;;  %v337_v31 = vpop.permute.xlu1 %336 }
  0xe4   : > { %319 = vst.msk [vmem:[#allocation2 + $0x4] sm:$0xf] %vm318_vm8, %v316_v29  ;;  %v331_v30 = vpop.permute.xlu0 %330  ;;  %v338_v33 = vrot.slane %v337_v31, 4 }
  0xe5   : > { %329 = vst.msk [vmem:[#allocation2 + $0x4] sm:$0xff] %vm328_vm9, %v324_v28  ;;  %v332_v32 = vrot.slane %v331_v30, 4 }
  0xe7   : > { %335 = vst.msk [vmem:[#allocation2 + $0x8] sm:$0xf] %vm334_vm10, %v332_v32  ;;  %vm613_vm10 = vcmask 240640  }
  0xe8   : > { %341 = vst.msk [vmem:[#allocation2 + $0x8] sm:$0xf] %vm340_vm11, %v338_v33  ;;  %vm661_vm11 = vcmask 1043608  }
  0xec   : > { %v1761_v34 = vld [vmem:[#allocation2] sm:$0xff] }
  0xed   : > { %362 = vrot.lane.b32.xlu0 %v1761_v34, %s1556_s18  ;;  %v1767_v35 = vcombine.high %v1761_v34, %v1761_v34  ;;  %v348_v38 = vcombine.low %v1761_v34, %v1761_v34 }
  0xef   : > { %v1769_v36 = vld [vmem:[#allocation2 + $0x8] sm:$0xf] }
  0xf0   : > { %v1326_v37 = vpack.i.bf16 %v1769_v36, %v1767_v35  ;;  %v349_v39 = vcombine.low %v1769_v36, %v1769_v36 }
  0xf1   : > { %386 = vrot.lane.b32.xlu0 %v1761_v34, %s1557_s27 }
  0xf2   : > { %1327 = vrot.lane.b32.xlu1 %v1326_v37, %s1556_s18  ;;  %v1341_v41 = vpack.i.bf16 %v349_v39, %v1761_v34 }
  0xf5   : > { %1332 = vrot.lane.b32.xlu0 %v1326_v37, %s1557_s27 }
  0xf6   : > { %350 = vrot.lane.b32.xlu1 %v348_v38, %s1558_s30 }
  0xf9   : > { %1337 = vrot.lane.b32.xlu0 %v1326_v37, %s1560_s4 }
  0xfa   : > { %374 = vrot.lane.b32.xlu1 %v348_v38, %s1561_s7 }
  0xfd   : > { %1342 = vrot.lane.b32.xlu0 %v1341_v41, %s1558_s30 }
  0xfe   : > { %398 = vrot.lane.b32.xlu1 %v348_v38, %s1562_s8 }
 0x101   : > { %1347 = vrot.lane.b32.xlu0 %v1341_v41, %s1561_s7 }
 0x102   : > { %1352 = vrot.lane.b32.xlu1 %v1341_v41, %s1562_s8 }
 0x105   : > { %410 = vrot.lane.b32.xlu0 %v1761_v34, %s1560_s4 }
 0x106   : > { %1357 = vrot.lane.b32.xlu1 %v1341_v41, %s1563_s9 }
 0x109   : > { %436 = vrot.lane.b32.xlu0 %v1767_v35, %s1565_s10 }
 0x10a   : > { %422 = vrot.lane.b32.xlu1 %v348_v38, %s1563_s9 }
 0x10d   : > { %434 = vrot.lane.b32.xlu0 %v1761_v34, %s1565_s10 }
 0x10e   : > { %438 = vrot.lane.b32.xlu1 %v1769_v36, %s1565_s10 }
 0x15f   : > { %v363_v42 = vpop.permute.xlu0 %362 }
 0x163   : > { %v1802_v43 = vpop.permute.xlu0 %386 }
 0x164   : > { %v1328_v44 = vpop.permute.xlu1 %1327 }
 0x165   : > { %v1330_v49 = vunpack.i.h.bf16 %v1328_v44  ;;  %v1329_v50 = vunpack.i.l.bf16 %v1328_v44 }
 0x167   : > { %v1804_v45 = vpop.permute.xlu0 %1332  ;;  %v370_v58 = vsel %vm368_vm13, %v1329_v50, %v1330_v49  ;;  %v369_v13 = vsel %vm368_vm13, %v363_v42, %v1329_v50  ;;  %v201_v42 = vld [vmem:[#allocation6] sm:$0xf] }
 0x168   : > { %v351_v46 = vpop.permute.xlu1 %350  ;;  %v1335_v55 = vunpack.i.h.bf16 %v1804_v45  ;;  %v1334_v56 = vunpack.i.l.bf16 %v1804_v45 }
 0x16a   : > { %v394_v22 = vsel %vm392_vm15, %v1334_v56, %v1335_v55  ;;  %v393_v33 = vsel %vm392_vm15, %v1802_v43, %v1334_v56 }
 0x16b   : > { %v1806_v47 = vpop.permute.xlu0 %1337 }
 0x16c   : > { %v375_v48 = vpop.permute.xlu1 %374  ;;  %v1340_v59 = vunpack.i.h.bf16 %v1806_v47  ;;  %v1339_v1 = vunpack.i.l.bf16 %v1806_v47 }
 0x16e   : > { %v418_v23 = vsel %vm416_vm1, %v1339_v1, %v1340_v59 }
 0x16f   : > { %v1343_v51 = vpop.permute.xlu0 %1342 }
 0x170   : > { %v1345_v52 = vunpack.i.h.bf16 %v1343_v51  ;;  %v1344_v53 = vunpack.i.l.bf16 %v1343_v51  ;;  %v399_v54 = vpop.permute.xlu1 %398 }
 0x172   : > { %v358_v63 = vsel %vm356_vm14, %v1344_v53, %v1345_v52  ;;  %v357_v4 = vsel %vm356_vm14, %v351_v46, %v1344_v53  ;;  %v446_v5 = vsel %vm443_vm2, %v1769_v36, %v1345_v52  ;;  %v203_v46 = vlaneseq }
 0x173   : > { %v1348_v57 = vpop.permute.xlu0 %1347  ;;  %v445_v11 = vsel %vm443_vm2, %v1767_v35, %v358_v63  ;;  %v444_v16 = vsel %vm443_vm2, %v1761_v34, %v357_v4 }
 0x174   : > { %v1350_v60 = vunpack.i.h.bf16 %v1348_v57  ;;  %v1349_v61 = vunpack.i.l.bf16 %v1348_v57  ;;  %v1353_v62 = vpop.permute.xlu1 %1352  ;;  %v204_v47 = vand.u32 127, %v203_v46 }
 0x175   : > { %v1355_v2 = vunpack.i.h.bf16 %v1353_v62  ;;  %v1354_v3 = vunpack.i.l.bf16 %v1353_v62 }
 0x176   : > { %v449_v6 = vsel %vm443_vm2, %v1330_v49, %v1350_v60  ;;  %v382_v7 = vsel %vm380_vm3, %v1349_v61, %v1350_v60  ;;  %v381_v8 = vsel %vm380_vm3, %v375_v48, %v1349_v61  ;;  %v206_v48 = vadd.s32 256, %v204_v47 }
 0x177   : > { %v411_v9 = vpop.permute.xlu0 %410  ;;  %v1211_v10 = vpack.c.bf16 %v449_v6, %v446_v5  ;;  %v448_v12 = vsel %vm443_vm2, %v370_v58, %v382_v7  ;;  %v447_v17 = vsel %vm443_vm2, %v369_v13, %v381_v8  ;;  %v406_v18 = vsel %vm404_vm0, %v1354_v3, %v1355_v2 }
 0x178   : > { %v1358_v14 = vpop.permute.xlu1 %1357  ;;  %v1202_v15 = vpack.c.bf16 %v448_v12, %v445_v11  ;;  %v1204_v21 = vpack.c.bf16 %v447_v17, %v444_v16  ;;  %v405_v24 = vsel %vm404_vm0, %v399_v54, %v1354_v3  ;;  %v452_v26 = vsel %vm443_vm2, %v1335_v55, %v1355_v2 }
 0x179   : > { %v1360_v19 = vunpack.i.h.bf16 %v1358_v14  ;;  %v1359_v20 = vunpack.i.l.bf16 %v1358_v14  ;;  %1212 = vmatpush3.bf16.msra.mxu1 %v1211_v10  ;;  %v451_v31 = vsel %vm443_vm2, %v394_v22, %v406_v18  ;;  %v417_v34 = vsel %vm416_vm1, %v411_v9, %v1339_v1 }
 0x17a   : > { %1203 = vmatprep.subr.bf16.mxu0 %v1202_v15  ;;  %1213 = vmatprep.subr.bf16.mxu1 %v1559_v40  ;;  %v450_v38 = vsel %vm443_vm2, %v393_v33, %v405_v24  ;;  %v205_v49 = vadd.s32 128, %v204_v47  ;;  %v209_v50 = vcvt.s32.f32 %v206_v48  ;;  %v207_v51 = vcvt.s32.f32 %v204_v47 }
 0x17b   : > { %v437_v25 = vpop.permute.xlu0 %436  ;;  %1205 = vmatpush1.bf16.msra.mxu0 %v1204_v21  ;;  %v455_v27 = vsel %vm443_vm2, %v1340_v59, %v1360_v19  ;;  %v430_v28 = vsel %vm428_vm4, %v1359_v20, %v1360_v19 }
 0x17c   : > { %v423_v29 = vpop.permute.xlu1 %422  ;;  %v1214_v30 = vpack.c.bf16 %v455_v27, %v452_v26  ;;  %v454_v32 = vsel %vm443_vm2, %v418_v23, %v430_v28  ;;  %v208_v52 = vcvt.s32.f32 %v205_v49  ;;  %v212_v53 = vmul.f32 0.055555556, %v209_v50 }
 0x17d   : > { %v429_v35 = vsel %vm428_vm4, %v423_v29, %v1359_v20  ;;  %v1206_v36 = vpack.c.bf16 %v454_v32, %v451_v31  ;;  %v210_v54 = vmul.f32 0.055555556, %v207_v51 }
 0x17e   : > { %v453_v37 = vsel %vm443_vm2, %v417_v34, %v429_v35  ;;  %1215 = vmatpush3.bf16.msra.mxu1 %v1214_v30  ;;  %v211_v55 = vmul.f32 0.055555556, %v208_v52  ;;  %v215_v56 = vfloor.f32 %v212_v53 }
 0x17f   : > { %1207 = vmatprep.subr.bf16.mxu0 %v1206_v36  ;;  %v1208_v39 = vpack.c.bf16 %v453_v37, %v450_v38  ;;  %1184 = vmatprep.subr.mxu1 %v1539_v0  ;;  %v435_v44 = vpop.permute.xlu0 %434  ;;  %v213_v57 = vfloor.f32 %v210_v54 }
 0x180   : > { %v439_v41 = vpop.permute.xlu1 %438  ;;  %v441_v45 = vsel %vm440_vm5, %v435_v44, %v437_v25  ;;  %v214_v58 = vfloor.f32 %v211_v55  ;;  %v218_v59 = vmul.f32 18.0, %v215_v56 }
 0x181   : > { %v442_v43 = vsel %vm440_vm5, %v437_v25, %v439_v41  ;;  %1209 = vmatpush1.bf16.msra.mxu0 %v1208_v39  ;;  %v216_v60 = vmul.f32 18.0, %v213_v57 }
 0x182   : > { %1147 = vmatprep.subr.msk.mxu0 %vm443_vm2, %v442_v43  ;;  %1185 = vmatpush3.msk.msra.mxu1 %vm443_vm2, %v439_v41  ;;  %v217_v61 = vmul.f32 18.0, %v214_v58  ;;  %v221_v62 = vsub.f32 %v209_v50, %v218_v59 }
 0x183   : > { %1187 = vmatmul.mubr.msk.f32.vlgmr.msra.gmra.mrb[0].mxu1 %vm456_vm6, %v201_v42  ;;  %1224 = vmatprep.subr.bf16.mxu1 %v1559_v40  ;;  %v219_v63 = vsub.f32 %v207_v51, %v216_v60 }
 0x184   : > { %1199 = vmatprep.mubr.msk.f32.mxu1 %vm1564_vm12, %v1539_v0  ;;  %v220_v1 = vsub.f32 %v208_v52, %v217_v61  ;;  %vm224_vm7 = vcmp.lt.f32.partialorder %v221_v62, 16.0  ;;  %vm662_vm12 = vcmask 1047556  }
 0x185   : > { %1148 = vmatpush1.msk.msra.mxu0 %vm443_vm2, %v441_v45  ;;  %vm222_vm8 = vcmp.lt.f32.partialorder %v219_v63, 16.0  ;;  %v1856_v2 = vsel %vm224_vm7, 1.0, %v1539_v0  ;;  %vm656_vm7 = vcmask 154624  }
 0x186   : > { %1149 = vmatmul.mubr.msk.f32.vlgmr.msra.gmra.mrb[0].mxu0 %vm456_vm6, %v201_v42  ;;  %vm223_vm9 = vcmp.lt.f32.partialorder %v220_v1, 16.0  ;;  %v1859_v4 = vsel %vm222_vm8, 1.0, %v1539_v0  ;;  %vm663_vm8 = vmor %vm662_vm12, %vm661_vm11 }
 0x187   : > { %845 = vmatprep.mubr.f32.mxu0 %v1539_v0  ;;  %v1862_v6 = vsel %vm223_vm9, 1.0, %v1539_v0  ;;  %vm665_vm9 = vcmask 396288  }
 0x256   : > { %v603_v3 = vpop.f32.mrb[0].mxu1 }
 0x257   : > { %v1188_v5 = vpop.f32.mrb[1].mxu1  ;;  %v609_v8 = vmul.f32 %v1856_v2, %v603_v3 }
 0x259   : > { %v532_v7 = vpop.f32.mrb[0].mxu0  ;;  %v620_v15 = vmul.f32 %v609_v8, %v603_v3  ;;  %v614_v17 = vsel %vm613_vm10, %v609_v8, 0.0 }
 0x25a   : > { %v607_v9 = vmul.f32 %v1859_v4, %v532_v7  ;;  %v534_v10 = vpop.f32.mrb[1].mxu0 }
 0x25b   : > { %v608_v11 = vmul.f32 %v1862_v6, %v534_v10  ;;  %v624_v23 = vsel %vm613_vm10, %v620_v15, 0.0 }
 0x25c   : > { %v618_v12 = vmul.f32 %v607_v9, %v532_v7  ;;  %v610_v13 = vsel %vm443_vm2, %v607_v9, 0.0 }
 0x25d   : > { %v619_v14 = vmul.f32 %v608_v11, %v534_v10  ;;  %v611_v16 = vsel %vm443_vm2, %v608_v11, 0.0 }
 0x25e   : > { %v612_v18 = vadd.f32 %v611_v16, %v610_v13  ;;  %v621_v19 = vsel %vm443_vm2, %v618_v12, 0.0 }
 0x25f   : > { %v622_v20 = vsel %vm443_vm2, %v619_v14, 0.0 }
 0x260   : > { %v615_v21 = vadd.f32 %v614_v17, %v612_v18  ;;  %v623_v22 = vadd.f32 %v622_v20, %v621_v19 }
 0x262   : > { %616 = vadd.xlane.f32.xlu1 %v615_v21  ;;  %v625_v24 = vadd.f32 %v624_v23, %v623_v22 }
 0x264   : > { %626 = vadd.xlane.f32.xlu0 %v625_v24 }
 0x2ef   : > { %v617_v25 = vpop.xlane.xlu1 %616 }
 0x2f0   : > { %v628_v26 = vmul.f32 0.00390625, %v617_v25 }
 0x2f1   : > { %v627_v27 = vpop.xlane.xlu0 %626 }
 0x2f2   : > { %v629_v28 = vmul.f32 0.00390625, %v627_v27  ;;  %v630_v29 = vmul.f32 %v628_v26, %v628_v26  ;;  %v633_v33 = vsub.f32 %v532_v7, %v628_v26  ;;  %v634_v34 = vsub.f32 %v534_v10, %v628_v26 }
 0x2f3   : > { %v635_v35 = vsub.f32 %v603_v3, %v628_v26 }
 0x2f4   : > { %v631_v30 = vsub.f32 %v629_v28, %v630_v29 }
 0x2f6   : > { %v632_v31 = vmax.f32 %v631_v30, 0.0 }
 0x2f8   : > { %v636_v32 = vadd.f32 1e-05, %v632_v31 }
 0x2fa   : > { %1402 = vrsqrt.f32 %v636_v32 }
 0x304   : > { %v1403_v36 = vpop.eup %1402 }
 0x305   : > { %v640_v37 = vmul.f32 %v1403_v36, %v635_v35  ;;  %v638_v38 = vmul.f32 %v1403_v36, %v633_v33  ;;  %v639_v39 = vmul.f32 %v1403_v36, %v634_v34 }
 0x307   : > { %v643_v41 = vmax.f32 %v640_v37, 0.0  ;;  %v641_v42 = vmax.f32 %v638_v38, 0.0  ;;  %v642_v44 = vmax.f32 %v639_v39, 0.0 }
 0x309   : > { %v646_v43 = vmul.f32 %v1856_v2, %v643_v41  ;;  %v644_v45 = vmul.f32 %v1859_v4, %v641_v42  ;;  %v645_v46 = vmul.f32 %v1862_v6, %v642_v44 }
 0x30b   : > { %653 = vrot.lane.b32.xlu1 %v646_v43, %s1541_s22  ;;  %v650_v47 = vcombine.low %v644_v45, %v645_v46 }
 0x30d   : > { %651 = vrot.lane.b32.xlu0 %v650_v47, %s1541_s22  ;;  %s199_s22 = scalar_lea.vmem [#allocation8], %s1141_s26 }
 0x30e   : > { %s1053_s21 = sshll.u32 %s199_s22, 4  ;;  %s1954_s21 = int_to_ptr.vmem [resolvable:$true] %s1053_s21 }
 0x37d   : > { %v654_v50 = vpop.permute.xlu1 %653 }
 0x37f   : > { %v652_v48 = vpop.permute.xlu0 %651 }
 0x380   : > { %v655_v49 = vrot.slane %v652_v48, 4 }
 0x382   : > { %v657_v51 = vsel %vm656_vm7, %v655_v49, %v652_v48  ;;  %v658_v52 = vsel %vm656_vm7, %v655_v49, %v654_v50 }
 0x383   : > { %664 = vst.msk [vmem:[#allocation2] sm:$0xff] %vm663_vm8, %v657_v51 }
 0x384   : > { %666 = vst.msk [vmem:[#allocation2 + $0x8] sm:$0xf] %vm665_vm9, %v658_v52 }
 0x38a   : > { %v667_v53 = vld [vmem:[#allocation2] sm:$0xff] }
 0x38b   : > { %686 = vrot.lane.b32.xlu1 %v667_v53, %s1556_s18  ;;  %v671_v54 = vcombine.high %v667_v53, %v667_v53  ;;  %v668_v55 = vld [vmem:[#allocation2 + $0x8] sm:$0xf]  ;;  %v673_v57 = vcombine.low %v667_v53, %v667_v53 }
 0x38c   : > { %v674_v58 = vcombine.low %v668_v55, %v668_v55 }
 0x38d   : > { %v1366_v56 = vpack.i.bf16 %v668_v55, %v671_v54 }
 0x38e   : > { %v1361_v59 = vpack.i.bf16 %v674_v58, %v667_v53 }
 0x38f   : > { %708 = vrot.lane.b32.xlu1 %v667_v53, %s1557_s27  ;;  %1367 = vrot.lane.b32.xlu0 %v1366_v56, %s1556_s18 }
 0x393   : > { %730 = vrot.lane.b32.xlu1 %v667_v53, %s1560_s4  ;;  %675 = vrot.lane.b32.xlu0 %v673_v57, %s1558_s30 }
 0x397   : > { %1362 = vrot.lane.b32.xlu1 %v1361_v59, %s1558_s30  ;;  %697 = vrot.lane.b32.xlu0 %v673_v57, %s1561_s7  ;;  %s1572_s30 = smov 104  }
 0x39b   : > { %1372 = vrot.lane.b32.xlu1 %v1361_v59, %s1561_s7  ;;  %1382 = vrot.lane.b32.xlu0 %v1361_v59, %s1562_s8 }
 0x39f   : > { %1377 = vrot.lane.b32.xlu1 %v1366_v56, %s1557_s27  ;;  %1392 = vrot.lane.b32.xlu0 %v1361_v59, %s1563_s9  ;;  %s1571_s27 = smov 118  }
 0x3a3   : > { %1387 = vrot.lane.b32.xlu1 %v1366_v56, %s1560_s4  ;;  %719 = vrot.lane.b32.xlu0 %v673_v57, %s1562_s8  ;;  %s1573_s4 = smov 100  }
 0x3a7   : > { %754 = vrot.lane.b32.xlu1 %v671_v54, %s1565_s10  ;;  %741 = vrot.lane.b32.xlu0 %v673_v57, %s1563_s9  ;;  %s1574_s9 = smov 102  }
 0x3ab   : > { %752 = vrot.lane.b32.xlu1 %v667_v53, %s1565_s10  ;;  %756 = vrot.lane.b32.xlu0 %v668_v55, %s1565_s10  ;;  %s1163_s10 = sshll.u32 %s1620_s16, 7  ;;  %s1578_s16 = smov [#allocation8]  }
 0x3ac   : > { %s1469_s26 = sshll.u32 %s1578_s16, 4  ;;  %s1470_s26 = int_to_ptr.vmem [resolvable:$false] %s1469_s26 }
 0x3ad   : > { %p1472_p13 = scmp.lt.s32.totalorder %s1954_s21, %s1470_s26 }
 0x3fd   : > { %v687_v60 = vpop.permute.xlu1 %686 }
 0x401   : > { %v709_v61 = vpop.permute.xlu1 %708  ;;  %v1368_v62 = vpop.permute.xlu0 %1367 }
 0x402   : > { %v1370_v7 = vunpack.i.h.bf16 %v1368_v62  ;;  %v1369_v8 = vunpack.i.l.bf16 %v1368_v62 }
 0x404   : > { %v692_v15 = vsel %vm368_vm13, %v687_v60, %v1369_v8  ;;  %v693_v16 = vsel %vm368_vm13, %v1369_v8, %v1370_v7  ;;  %vm1011_vm13 = vcmask 130048  }
 0x405   : > { %v731_v63 = vpop.permute.xlu1 %730  ;;  %v676_v1 = vpop.permute.xlu0 %675 }
 0x409   : > { %v1363_v3 = vpop.permute.xlu1 %1362  ;;  %v698_v5 = vpop.permute.xlu0 %697 }
 0x40a   : > { %v1365_v9 = vunpack.i.h.bf16 %v1363_v3  ;;  %v1364_v10 = vunpack.i.l.bf16 %v1363_v3 }
 0x40c   : > { %v681_v17 = vsel %vm356_vm14, %v676_v1, %v1364_v10  ;;  %v682_v18 = vsel %vm356_vm14, %v1364_v10, %v1365_v9  ;;  %v762_v19 = vsel %vm443_vm2, %v668_v55, %v1365_v9  ;;  %v202_v1 = vld [vmem:[%s1998_s2] sm:$0xf]  ;;  %vm1013_vm14 = vcmask 261120  }
 0x40d   : > { %v1373_v11 = vpop.permute.xlu1 %1372  ;;  %v1383_v12 = vpop.permute.xlu0 %1382  ;;  %v761_v30 = vsel %vm443_vm2, %v671_v54, %v682_v18  ;;  %v760_v31 = vsel %vm443_vm2, %v667_v53, %v681_v17 }
 0x40e   : > { %v1375_v13 = vunpack.i.h.bf16 %v1373_v11  ;;  %v1374_v14 = vunpack.i.l.bf16 %v1373_v11  ;;  %v1385_v32 = vunpack.i.h.bf16 %v1383_v12  ;;  %v1384_v33 = vunpack.i.l.bf16 %v1383_v12 }
 0x410   : > { %v703_v20 = vsel %vm380_vm3, %v698_v5, %v1374_v14  ;;  %v704_v21 = vsel %vm380_vm3, %v1374_v14, %v1375_v13  ;;  %v765_v22 = vsel %vm443_vm2, %v1370_v7, %v1375_v13  ;;  %v726_v43 = vsel %vm404_vm0, %v1384_v33, %v1385_v32 }
 0x411   : > { %v1225_v23 = vpack.c.bf16 %v765_v22, %v762_v19  ;;  %v1378_v24 = vpop.permute.xlu1 %1377  ;;  %v1393_v25 = vpop.permute.xlu0 %1392  ;;  %v764_v26 = vsel %vm443_vm2, %v693_v16, %v704_v21  ;;  %v763_v27 = vsel %vm443_vm2, %v692_v15, %v703_v20  ;;  %vm1019_vm3 = vcmask 654336  }
 0x412   : > { %v1380_v28 = vunpack.i.h.bf16 %v1378_v24  ;;  %v1379_v29 = vunpack.i.l.bf16 %v1378_v24  ;;  %v1216_v34 = vpack.c.bf16 %v764_v26, %v761_v30  ;;  %v1218_v35 = vpack.c.bf16 %v763_v27, %v760_v31 }
 0x413   : > { %1226 = vmatpush3.bf16.msra.mxu1 %v1225_v23  ;;  %v1395_v36 = vunpack.i.h.bf16 %v1393_v25  ;;  %v1394_v37 = vunpack.i.l.bf16 %v1393_v25 }
 0x414   : > { %1227 = vmatprep.subr.bf16.mxu1 %v1559_v40  ;;  %1217 = vmatprep.subr.bf16.mxu0 %v1216_v34  ;;  %v715_v41 = vsel %vm392_vm15, %v1379_v29, %v1380_v28  ;;  %v768_v45 = vsel %vm443_vm2, %v1380_v28, %v1385_v32  ;;  %v714_v54 = vsel %vm392_vm15, %v709_v61, %v1379_v29  ;;  %vm1015_vm15 = vcmask 392192  }
 0x415   : > { %v1388_v38 = vpop.permute.xlu1 %1387  ;;  %v720_v39 = vpop.permute.xlu0 %719  ;;  %1219 = vmatpush1.bf16.msra.mxu0 %v1218_v35  ;;  %v748_v46 = vsel %vm428_vm4, %v1394_v37, %v1395_v36  ;;  %v767_v52 = vsel %vm443_vm2, %v715_v41, %v726_v43 }
 0x416   : > { %v1390_v42 = vunpack.i.h.bf16 %v1388_v38  ;;  %v1389_v44 = vunpack.i.l.bf16 %v1388_v38  ;;  %v725_v40 = vsel %vm404_vm0, %v720_v39, %v1384_v33  ;;  %vm1005_vm0 = vcmask 818176  }
 0x417   : > { %v766_v58 = vsel %vm443_vm2, %v714_v54, %v725_v40 }
 0x418   : > { %v737_v47 = vsel %vm416_vm1, %v1389_v44, %v1390_v42  ;;  %v771_v48 = vsel %vm443_vm2, %v1390_v42, %v1395_v36  ;;  %v736_v55 = vsel %vm416_vm1, %v731_v63, %v1389_v44  ;;  %vm1017_vm1 = vcmask 523264  }
 0x419   : > { %v1228_v49 = vpack.c.bf16 %v771_v48, %v768_v45  ;;  %v755_v50 = vpop.permute.xlu1 %754  ;;  %v742_v51 = vpop.permute.xlu0 %741  ;;  %v770_v53 = vsel %vm443_vm2, %v737_v47, %v748_v46 }
 0x41a   : > { %v747_v56 = vsel %vm428_vm4, %v742_v51, %v1394_v37  ;;  %v1220_v57 = vpack.c.bf16 %v770_v53, %v767_v52  ;;  %vm1021_vm4 = vcmask 785408  }
 0x41b   : > { %v769_v59 = vsel %vm443_vm2, %v736_v55, %v747_v56  ;;  %1229 = vmatpush3.bf16.msra.mxu1 %v1228_v49 }
 0x41c   : > { %v1222_v60 = vpack.c.bf16 %v769_v59, %v766_v58  ;;  %1221 = vmatprep.subr.bf16.mxu0 %v1220_v57  ;;  %1197 = vmatprep.subr.mxu1 %v1539_v0 }
 0x41d   : > { %v757_v62 = vpop.permute.xlu0 %756  ;;  %v753_v61 = vpop.permute.xlu1 %752 }
 0x41e   : > { %v759_v63 = vsel %vm440_vm5, %v755_v50, %v757_v62  ;;  %1223 = vmatpush1.bf16.msra.mxu0 %v1222_v60  ;;  %v758_v3 = vsel %vm440_vm5, %v753_v61, %v755_v50  ;;  %vm1023_vm5 = vcmask 916480  }
 0x41f   : > { %1152 = vmatprep.subr.msk.mxu0 %vm443_vm2, %v759_v63  ;;  %1198 = vmatpush3.msk.msra.mxu1 %vm443_vm2, %v757_v62 }
 0x420   : > { %1200 = vmatmul.mubr.msk.f32.vlgmr.msra.gmra.mrb[2].mxu1 %vm456_vm6, %v202_v1 }
 0x422   : > { %1153 = vmatpush1.msk.msra.mxu0 %vm443_vm2, %v758_v3 }
 0x423   : > { %1154 = vmatmul.mubr.msk.f32.vlgmr.msra.gmra.mrb[2].mxu0 %vm456_vm6, %v202_v1 }
 0x4f3   : > { %v918_v0 = vpop.f32.mrb[2].mxu1 }
 0x4f4   : > { %v1201_v5 = vpop.f32.mrb[3].mxu1  ;;  %v924_v8 = vmul.f32 %v1856_v2, %v918_v0 }
 0x4f6   : > { %v847_v7 = vpop.f32.mrb[2].mxu0  ;;  %v934_v16 = vmul.f32 %v924_v8, %v918_v0  ;;  %v928_v17 = vsel %vm613_vm10, %v924_v8, 0.0 }
 0x4f7   : > { %v922_v9 = vmul.f32 %v1859_v4, %v847_v7  ;;  %v849_v10 = vpop.f32.mrb[3].mxu0 }
 0x4f8   : > { %v923_v11 = vmul.f32 %v1862_v6, %v849_v10  ;;  %v938_v4 = vsel %vm613_vm10, %v934_v16, 0.0 }
 0x4f9   : > { %v932_v12 = vmul.f32 %v922_v9, %v847_v7  ;;  %v925_v13 = vsel %vm443_vm2, %v922_v9, 0.0 }
 0x4fa   : > { %v926_v14 = vsel %vm443_vm2, %v923_v11, 0.0  ;;  %v933_v15 = vmul.f32 %v923_v11, %v849_v10 }
 0x4fb   : > { %v927_v18 = vadd.f32 %v926_v14, %v925_v13  ;;  %v935_v19 = vsel %vm443_vm2, %v932_v12, 0.0 }
 0x4fc   : > { %v936_v20 = vsel %vm443_vm2, %v933_v15, 0.0  ;;  %vm979_vm2 = vcmask 932864  }
 0x4fd   : > { %v929_v2 = vadd.f32 %v928_v17, %v927_v18  ;;  %v937_v21 = vadd.f32 %v936_v20, %v935_v19 }
 0x4ff   : > { %930 = vadd.xlane.f32.xlu0 %v929_v2  ;;  %v939_v6 = vadd.f32 %v938_v4, %v937_v21 }
 0x501   : > { %940 = vadd.xlane.f32.xlu1 %v939_v6 }
 0x58c   : > { %v931_v22 = vpop.xlane.xlu0 %930 }
 0x58d   : > { %v942_v23 = vmul.f32 0.00390625, %v931_v22 }
 0x58e   : > { %v941_v24 = vpop.xlane.xlu1 %940 }
 0x58f   : > { %v943_v25 = vmul.f32 0.00390625, %v941_v24  ;;  %v944_v26 = vmul.f32 %v942_v23, %v942_v23  ;;  %v947_v30 = vsub.f32 %v847_v7, %v942_v23  ;;  %v948_v31 = vsub.f32 %v849_v10, %v942_v23  ;;  %v1406_v10 = vld [vmem:[%s1746_s6] sm:$0xff]  ;;  %s1471_s6 = scalar_lea.vmem %s1470_s26, 256 }
 0x590   : > { %v949_v35 = vsub.f32 %v918_v0, %v942_v23 }
 0x591   : > { %v945_v27 = vsub.f32 %v943_v25, %v944_v26 }
 0x593   : > { %v946_v28 = vmax.f32 %v945_v27, 0.0 }
 0x595   : > { %v950_v29 = vadd.f32 1e-05, %v946_v28 }
 0x597   : > { %1404 = vrsqrt.f32 %v950_v29 }
 0x5a1   : > { %v1405_v32 = vpop.eup %1404 }
 0x5a2   : > { %v952_v33 = vmul.f32 %v1405_v32, %v947_v30  ;;  %v953_v34 = vmul.f32 %v1405_v32, %v948_v31  ;;  %v954_v36 = vmul.f32 %v1405_v32, %v949_v35 }
 0x5a4   : > { %982 = vrot.lane.b32.xlu1 %v953_v34, %s1566_s24  ;;  %956 = vrot.lane.b32.xlu0 %v952_v33, %s1556_s18  ;;  %s1575_s18 = smov 116  }
 0x5a8   : > { %959 = vrot.lane.b32.xlu1 %v952_v33, %s1567_s25  ;;  %985 = vrot.lane.b32.xlu0 %v953_v34, %s1561_s7  ;;  %s1576_s7 = smov 114  }
 0x5ac   : > { %962 = vrot.lane.b32.xlu1 %v952_v33, %s1568_s28  ;;  %988 = vrot.lane.b32.xlu0 %v953_v34, %s1562_s8  ;;  %s1577_s8 = smov 98   ;;  %s1952_s28 = scalar_lea.hbm %s1999_s3, %s1163_s10 }
 0x5b0   : > { %965 = vrot.lane.b32.xlu1 %v952_v33, %s1569_s5  ;;  %991 = vrot.lane.b32.xlu0 %v953_v34, %s1570_s20  ;;  %s1039_s5 = scalar_lea.sflag [#allocation5], %s1740_s29  ;;  %s1465_s20 = scalar_lea.vmem %s1954_s21, 128 }
 0x5b1   : > { %p1466_p6 = scmp.ne.s32.totalorder %s1954_s21, %s1465_s20  ;;  %p1473_p0 = scmp.lt.s32.totalorder %s1471_s6, %s1465_s20 }
 0x5b3   : > { %p1467_p9 = pnand %p1466_p6, %p1691_p8  ;;  %p1474_p5 = por %p1473_p0, %p1472_p13 }
 0x5b4   : > { %968 = vrot.lane.b32.xlu1 %v952_v33, %s1571_s27  ;;  %994 = vrot.lane.b32.xlu0 %v953_v34, %s1572_s30 }
 0x5b5   : > { %p1468_p12 = pneg %p1467_p9 }
 0x5b7   : > { %p1475_p10 = pnand %p1474_p5, %p1468_p12 }
 0x5b8   : > { %1001 = vrot.lane.b32.xlu1 %v953_v34, %s1573_s4  ;;  %997 = vrot.lane.b32.xlu0 %v953_v34, %s1574_s9 }
 0x5bc   : > { %971 = vrot.lane.b32.xlu1 %v952_v33, %s1575_s18  ;;  %1003 = vrot.lane.b32.xlu0 %v954_v36, %s1573_s4 }
 0x5c0   : > { %977 = vrot.lane.b32.xlu1 %v953_v34, %s1576_s7  ;;  %975 = vrot.lane.b32.xlu0 %v952_v33, %s1576_s7 }
 0x5c4   : > { %1008 = vrot.lane.b32.xlu0 %v954_v36, %s1577_s8 }
 0x616   : > { %v983_v37 = vpop.permute.xlu1 %982  ;;  %v957_v38 = vpop.permute.xlu0 %956 }
 0x617   : > { %v1012_v51 = vsel %vm1011_vm13, %v952_v33, %v957_v38 }
 0x61a   : > { %v960_v39 = vpop.permute.xlu1 %959  ;;  %v986_v41 = vpop.permute.xlu0 %985 }
 0x61b   : > { %v1025_v52 = vsel %vm1011_vm13, %v983_v37, %v986_v41  ;;  %v1014_v53 = vsel %vm1013_vm14, %v1012_v51, %v960_v39 }
 0x61e   : > { %v963_v42 = vpop.permute.xlu1 %962  ;;  %v989_v44 = vpop.permute.xlu0 %988 }
 0x61f   : > { %v1026_v54 = vsel %vm1013_vm14, %v1025_v52, %v989_v44  ;;  %v1016_v57 = vsel %vm1015_vm15, %v1014_v53, %v963_v42 }
 0x622   : > { %v966_v43 = vpop.permute.xlu1 %965  ;;  %v992_v45 = vpop.permute.xlu0 %991 }
 0x623   : > { %v1027_v58 = vsel %vm1015_vm15, %v1026_v54, %v992_v45  ;;  %v1018_v60 = vsel %vm1017_vm1, %v1016_v57, %v966_v43 }
 0x626   : > { %v969_v46 = vpop.permute.xlu1 %968  ;;  %v995_v47 = vpop.permute.xlu0 %994 }
 0x627   : > { %v1028_v62 = vsel %vm1017_vm1, %v1027_v58, %v995_v47  ;;  %v1020_v61 = vsel %vm1019_vm3, %v1018_v60, %v969_v46 }
 0x62a   : > { %v1002_v48 = vpop.permute.xlu1 %1001  ;;  %v998_v40 = vpop.permute.xlu0 %997 }
 0x62b   : > { %v1029_v63 = vsel %vm1019_vm3, %v1028_v62, %v998_v40 }
 0x62e   : > { %v972_v49 = vpop.permute.xlu1 %971  ;;  %v1004_v50 = vpop.permute.xlu0 %1003 }
 0x62f   : > { %v1006_v59 = vsel %vm1005_vm0, %v1002_v48, %v1004_v50  ;;  %v1022_v3 = vsel %vm1021_vm4, %v1020_v61, %v972_v49 }
 0x630   : > { %v1030_v0 = vsel %vm1021_vm4, %v1029_v63, %v1006_v59 }
 0x632   : > { %v978_v55 = vpop.permute.xlu1 %977  ;;  %v976_v56 = vpop.permute.xlu0 %975 }
 0x633   : > { %v980_v1 = vsel %vm979_vm2, %v976_v56, %v978_v55 }
 0x634   : > { %v1024_v7 = vsel %vm1023_vm5, %v1022_v3, %v980_v1 }
 0x636   : > { %v1009_v5 = vpop.permute.xlu0 %1008 }
 0x637   : > { %v1031_v8 = vsel %vm1023_vm5, %v1030_v0, %v1009_v5 }
 0x638   : > { %v1034_v9 = vcombine.low %v1024_v7, %v1031_v8 }
 0x63a   : > { %v1036_v11 = vadd.f32 %v1406_v10, %v1034_v9 }
 0x63c   : > { %1037 = vst [vmem:[%s199_s22] sm:$0xff] %v1036_v11 }
 0x63d   : > { %1478 = shalt.err (!%p1475_p10)
}
 0x63e   : > { %s1479_s29 = scalar_lea.hbm %s1952_s28, 128  ;;  %s1483_s4 = scalar_lea.hbm %s1999_s3, 256 }
 0x63f   : > { %p1480_p1 = scmp.ne.s32.totalorder %s1952_s28, %s1479_s29  ;;  %p1484_p3 = scmp.lt.u32.totalorder %s1952_s28, %s1999_s3 }
 0x640   : > { %p1485_p11 = scmp.lt.u32.totalorder %s1483_s4, %s1479_s29  ;;  %p1487_p6 = scmp.lt.u32.totalorder %s1479_s29, %s1952_s28 }
 0x641   : > { %p1481_p2 = pnand %p1480_p1, %p1691_p8 }
 0x642   : > { %p1486_p4 = por %p1485_p11, %p1484_p3 }
 0x643   : > { %p1482_p7 = pneg %p1481_p2 }
 0x644   : > { %p1488_p9 = por %p1487_p6, %p1486_p4 }
 0x646   : > { %p1489_p12 = pnand %p1488_p9, %p1482_p7 }
 0x648   : > { %1492 = shalt.err (!%p1489_p12)
}
 0x649   : > { %1236 = dma.vmem_to_hbm [thread:$0]  (%p1691_p8), %s1954_s21, 128, %s1952_s28, %s1039_s5  }
 0x64a PF: > { %s1065_s7 = sand.u32 1, %s1523_s12   ;;  %p2018_p13 = scmp.ne.s32.totalorder %s2004_s19, 0 }
 0x64b   : > { %p2019_p0 = scmp.ge.s32.totalorder %s1535_s15, 2  ;;  %s1066_s8 = scalar_lea.sflag [#allocation5], %s1065_s7 }
 0x64d   : > { %p1247_p5 = pnand %p2019_p0, %p2018_p13 }
 0x64f   : > { %1518 = dma.done.wait (!%p1247_p5), %s1066_s8, 128  }
 0x650   : > { %1520 = vsyncadd (!%p1247_p5), %s1066_s8, 4294967168  ;;  %p17_p10 = scmp.ge.s32.totalorder %s1647_s23, 4   ;;  %s2020_s12 = smov %s1527_s13 }
 0x651   : > { %s2021_s13 = smov %s1531_s14  ;;  %s2022_s14 = smov %s1683_s11 }
 0x652   : > { %s2023_s15 = smov %s1647_s23  ;;  %19 = sbr.rel (!%p17_p10) target bundleno = 6 (0x6), region = 81 }
 0x659   :  { %1071 = vsyncpa [#allocation4], 1 }
 0x65a   :  { %1073 = vsyncpa [#allocation4 + $0x1], 1 }
 0x65b   :  { %1074 = vsyncpa [#allocation7], 1 }
 0x65c   :  { %1075 = vsyncpa [#allocation5], 1 }
 0x65d   :  { %1077 = vsyncpa [#allocation5 + $0x1], 1 }

</bundles_post_ra>
